<compile_context>
chip_gen: v5e
topology: v5e:2x2
jax: 0.10.0
libtpu: 0.0.40
codegen_flags: <defaults>
</compile_context>

<pallas_src>
import functools

import jax
import jax.numpy as jnp
from jax.experimental import pallas as pl
from jax.experimental.pallas import tpu as pltpu

BN_EPS = 1e-5  # nn.BatchNorm2d default


def _round_up(x, m):
    return (x + m - 1) // m * m


def _vmem_budget_bytes():
    """(fused-path usage budget, vmem_limit_bytes); conservative for v7x (64 MiB)."""
    try:
        cap = int(pltpu.get_tpu_info().vmem_capacity_bytes)
    except Exception:
        cap = 64 * 1024 * 1024
    if cap >= 96 * 1024 * 1024:          # v5e / v6e: 128 MiB physical VMEM
        return 80 * 1024 * 1024, 100 * 1024 * 1024
    return 20 * 1024 * 1024, 32 * 1024 * 1024   # v7x: 64 MiB physical VMEM


# ---------------------------------------------------------------------------
# Fused single-kernel path: conv slab resident in VMEM across the M grid axis.
# ---------------------------------------------------------------------------
def fused_conv_bn_relu_kernel(patches_ref, w_ref, gamma_ref, beta_ref,
                              out_ref, sum_ref, sumsq_ref, *, m_total, tile_m):
    i = pl.program_id(0)

    @pl.when(i == 0)
    def _init():
        sum_ref[...] = jnp.zeros_like(sum_ref)
        sumsq_ref[...] = jnp.zeros_like(sumsq_ref)

    # (C_out, K) @ (K, tile_m) -> (C_out, tile_m), f32 accumulation on the MXU.
    conv = jnp.dot(w_ref[...], patches_ref[...],
                   preferred_element_type=jnp.float32)
    off = pl.multiple_of(i * tile_m, tile_m)
    out_ref[:, pl.ds(off, tile_m)] = conv

    # Zero-padded lane columns give conv == 0 exactly (no bias added), so they
    # contribute nothing to the statistics: no masking needed on any tile.
    sum_ref[...] += jnp.sum(conv, axis=1, keepdims=True)
    sumsq_ref[...] += jnp.sum(conv * conv, axis=1, keepdims=True)

    @pl.when(i == pl.num_programs(0) - 1)
    def _finalize():
        inv_m = 1.0 / m_total
        mean = sum_ref[...] * inv_m                              # (C_out, 1)
        var = jnp.maximum(sumsq_ref[...] * inv_m - mean * mean, 0.0)
        scale = gamma_ref[...] * jax.lax.rsqrt(var + BN_EPS)     # EUP
        shift = beta_ref[...] - mean * scale
        # Normalize + ReLU the whole VMEM-resident slab in place; only then is
        # the output block flushed to HBM (single f32 write).
        out_ref[...] = jnp.maximum(out_ref[...] * scale + shift, 0.0)


# ---------------------------------------------------------------------------
# Tiled two-pass fallback (bf16 conv intermediate, per-core partial stats).
# ---------------------------------------------------------------------------
def conv_stats_kernel(patches_ref, w_ref, conv_ref, sum_ref, sumsq_ref):
    i = pl.program_id(1)            # axis 1 is the "arbitrary" reduction axis

    @pl.when(i == 0)
    def _init():
        sum_ref[...] = jnp.zeros_like(sum_ref)
        sumsq_ref[...] = jnp.zeros_like(sumsq_ref)

    conv = jnp.dot(w_ref[...], patches_ref[...],
                   preferred_element_type=jnp.float32)
    conv_ref[...] = conv.astype(conv_ref.dtype)                  # bf16 intermediate
    sum_ref[...] += jnp.sum(conv, axis=1, keepdims=True)[None]
    sumsq_ref[...] += jnp.sum(conv * conv, axis=1, keepdims=True)[None]


def bn_relu_kernel(conv_ref, scale_ref, shift_ref, out_ref):
    out_ref[...] = jnp.maximum(
        conv_ref[...].astype(jnp.float32) * scale_ref[...] + shift_ref[...], 0.0)


# ---------------------------------------------------------------------------
# Wrapper
# ---------------------------------------------------------------------------
def first_unit(x_nchw, weight, bias, gamma, beta, *, stride=2, padding=3,
               force_tiled=False, tile_m=None):
    """FirstUnit forward. x_nchw: (N, C_in, H, W); weight: (C_out, C_in, 3, 3).

    `bias` is accepted for interface parity but is not used in the kernels:
    a per-channel conv bias cancels exactly through training-mode BatchNorm.
    """
    del bias  # cancels analytically (mean absorbs it, variance is unaffected)

    N, C_in, H, W = x_nchw.shape
    C_out, _, KH, KW = weight.shape
    H_out = (H + 2 * padding - KH) // stride + 1
    W_out = (W + 2 * padding - KW) // stride + 1
    M = N * H_out * W_out
    K = KH * KW * C_in

    # ---- glue: pad NCHW in bf16, build transposed patch matrix (K, M) ----
    # TODO(synk): im2col patches are still materialized by XLA (bf16, half the
    # bytes of an f32 im2col); a fully in-kernel 9-shifted-GEMM over the padded
    # input would need stride-2 VMEM gathers that do not lower cleanly today.
    xp = jnp.pad(x_nchw.astype(jnp.bfloat16),
                 ((0, 0), (0, 0), (padding, padding), (padding, padding)))
    taps = []
    for kh in range(KH):
        for kw in range(KW):
            taps.append(xp[:, :, kh:kh + stride * (H_out - 1) + 1:stride,
                               kw:kw + stride * (W_out - 1) + 1:stride])
    # (KH*KW, N, C_in, Ho, Wo) -> (KH*KW, C_in, N, Ho, Wo) -> (K, M)
    patches_t = jnp.stack(taps, axis=0).transpose(0, 2, 1, 3, 4).reshape(K, M)

    # weight (C_out, C_in, kh, kw) -> (C_out, kh, kw, C_in) -> (C_out, K), bf16.
    w_mat = jnp.transpose(weight, (0, 2, 3, 1)).reshape(C_out, K).astype(jnp.bfloat16)
    gamma_col = gamma.reshape(C_out, 1).astype(jnp.float32)
    beta_col = beta.reshape(C_out, 1).astype(jnp.float32)

    if tile_m is None:
        tile_m = min(4096, _round_up(M, 128))
    TILE_M = _round_up(tile_m, 128)

    budget, fused_vmem_limit = _vmem_budget_bytes()
    M_pad_fused = _round_up(M, TILE_M)
    n_tiles_fused = M_pad_fused // TILE_M
    fused_bytes = (2 * C_out * M_pad_fused * 4          # resident slab (2x slack)
                   + 2 * K * TILE_M * 2                 # double-buffered patch tiles
                   + 2 * (C_out * K * 2 + 2 * C_out * 4))
    use_fused = (not force_tiled) and fused_bytes <= budget

    if use_fused:
        patches_p = jnp.pad(patches_t, ((0, 0), (0, M_pad_fused - M)))
        cost = pl.CostEstimate(
            flops=2 * C_out * K * M_pad_fused + 7 * C_out * M_pad_fused,
            transcendentals=C_out,
            bytes_accessed=(patches_p.size * 2 + w_mat.size * 2
                            + 2 * C_out * 4 + C_out * M_pad_fused * 4))
        out_t = pl.pallas_call(
            functools.partial(fused_conv_bn_relu_kernel, m_total=M, tile_m=TILE_M),
            out_shape=jax.ShapeDtypeStruct((C_out, M_pad_fused), jnp.float32),
            grid=(n_tiles_fused,),
            in_specs=[pl.BlockSpec((K, TILE_M), lambda i: (0, i)),
                      pl.BlockSpec((C_out, K), lambda i: (0, 0)),
                      pl.BlockSpec((C_out, 1), lambda i: (0, 0)),
                      pl.BlockSpec((C_out, 1), lambda i: (0, 0))],
            out_specs=pl.BlockSpec((C_out, M_pad_fused), lambda i: (0, 0)),
            scratch_shapes=[pltpu.VMEM((C_out, 1), jnp.float32),
                            pltpu.VMEM((C_out, 1), jnp.float32)],
            compiler_params=pltpu.CompilerParams(
                dimension_semantics=("arbitrary",),
                vmem_limit_bytes=fused_vmem_limit),
            cost_estimate=cost,
        )(patches_p, w_mat, gamma_col, beta_col)
    else:
        # ---- pass 1: conv matmul (bf16 out) + per-core partial sum / sumsq ----
        n_tiles = pl.cdiv(M, TILE_M)
        NCORES = 2 if n_tiles >= 2 else 1        # v7x: both TensorCores in pass 1
        tpc = -(-n_tiles // NCORES)              # tiles per core
        M_pad = NCORES * tpc * TILE_M
        n_tiles_total = NCORES * tpc
        patches_p = jnp.pad(patches_t, ((0, 0), (0, M_pad - M)))

        cost1 = pl.CostEstimate(
            flops=2 * C_out * K * M_pad + 4 * C_out * M_pad,
            transcendentals=0,
            bytes_accessed=(patches_p.size * 2 + w_mat.size * 2
                            + C_out * M_pad * 2 + NCORES * 2 * C_out * 4))
        conv_t, s_parts, ss_parts = pl.pallas_call(
            conv_stats_kernel,
            out_shape=(jax.ShapeDtypeStruct((C_out, M_pad), jnp.bfloat16),
                       jax.ShapeDtypeStruct((NCORES, C_out, 1), jnp.float32),
                       jax.ShapeDtypeStruct((NCORES, C_out, 1), jnp.float32)),
            grid=(NCORES, tpc),
            in_specs=[pl.BlockSpec((K, TILE_M), lambda c, i: (0, c * tpc + i)),
                      pl.BlockSpec((C_out, K), lambda c, i: (0, 0))],
            out_specs=(pl.BlockSpec((C_out, TILE_M), lambda c, i: (0, c * tpc + i)),
                       pl.BlockSpec((1, C_out, 1), lambda c, i: (c, 0, 0)),
                       pl.BlockSpec((1, C_out, 1), lambda c, i: (c, 0, 0))),
            compiler_params=pltpu.CompilerParams(
                dimension_semantics=("parallel", "arbitrary"),
                vmem_limit_bytes=32 * 1024 * 1024),
            cost_estimate=cost1,
        )(patches_p, w_mat)

        # ---- per-channel BN coefficients (tiny: C_out elements, plain jnp glue) ----
        s = jnp.sum(s_parts, axis=0)[:, 0]
        ss = jnp.sum(ss_parts, axis=0)[:, 0]
        mean = s / M
        var = jnp.maximum(ss / M - mean * mean, 0.0)
        inv = jax.lax.rsqrt(var + BN_EPS)
        g = gamma.astype(jnp.float32)
        scale = (g * inv).reshape(C_out, 1)
        shift = (beta.astype(jnp.float32) - mean * g * inv).reshape(C_out, 1)

        # ---- pass 2: normalize + ReLU, lane-dense ----
        cost2 = pl.CostEstimate(
            flops=3 * C_out * M_pad, transcendentals=0,
            bytes_accessed=C_out * M_pad * 2 + C_out * M_pad * 4 + 2 * C_out * 4)
        out_t = pl.pallas_call(
            bn_relu_kernel,
            out_shape=jax.ShapeDtypeStruct((C_out, M_pad), jnp.float32),
            grid=(n_tiles_total,),
            in_specs=[pl.BlockSpec((C_out, TILE_M), lambda i: (0, i)),
                      pl.BlockSpec((C_out, 1), lambda i: (0, 0)),
                      pl.BlockSpec((C_out, 1), lambda i: (0, 0))],
            out_specs=pl.BlockSpec((C_out, TILE_M), lambda i: (0, i)),
            compiler_params=pltpu.CompilerParams(
                dimension_semantics=("parallel",),
                vmem_limit_bytes=32 * 1024 * 1024),
            cost_estimate=cost2,
        )(conv_t, scale, shift)

    # TODO(synk): running_mean / running_var updates (stateful training side
    # effect of nn.BatchNorm2d) are not produced; forward activations only.
    out = out_t[:, :M].reshape(C_out, N, H_out, W_out)
    # TODO(synk): the final NCHW permute is one extra XLA transpose of the
    # largest tensor; return the (C_out, N, Ho, Wo) slab if the consumer allows.
    return jnp.transpose(out, (1, 0, 2, 3))


def first_unit_reference(x_nchw, weight, bias, gamma, beta, *, stride=2, padding=3):
    """Pure-JAX reference (same math, no Pallas) for a sanity check."""
    conv = jax.lax.conv_general_dilated(
        x_nchw.astype(jnp.float32), weight.astype(jnp.float32),
        window_strides=(stride, stride),
        padding=((padding, padding), (padding, padding)),
        dimension_numbers=("NCHW", "OIHW", "NCHW"))
    conv = conv + bias.reshape(1, -1, 1, 1)
    mean = jnp.mean(conv, axis=(0, 2, 3), keepdims=True)
    var = jnp.mean((conv - mean) ** 2, axis=(0, 2, 3), keepdims=True)
    y = (conv - mean) * jax.lax.rsqrt(var + BN_EPS)
    y = y * gamma.reshape(1, -1, 1, 1) + beta.reshape(1, -1, 1, 1)
    return jnp.maximum(y, 0.0)


if __name__ == "__main__":
    # Small deterministic setup consistent with FirstUnit(in_planes=4, out_planes=8)
    N, C_in, H, W = 2, 4, 16, 16
    C_out = 8

    key = jax.random.PRNGKey(0)
    kx, kw, kb, kg, kbe = jax.random.split(key, 5)
    x = jax.random.normal(kx, (N, C_in, H, W), dtype=jnp.float32)
    weight = jax.random.normal(kw, (C_out, C_in, 3, 3), dtype=jnp.float32) * 0.1
    bias = jax.random.normal(kb, (C_out,), dtype=jnp.float32) * 0.1
    gamma = 1.0 + 0.1 * jax.random.normal(kg, (C_out,), dtype=jnp.float32)
    beta = 0.1 * jax.random.normal(kbe, (C_out,), dtype=jnp.float32)

    # Expected output spatial size: (16 + 2*3 - 3)//2 + 1 = 10
    ref = first_unit_reference(x, weight, bias, gamma, beta)
    assert ref.shape == (N, C_out, 10, 10), ref.shape

    # Default: fused single-kernel path (VMEM-resident conv slab).
    out = jax.block_until_ready(jax.jit(first_unit)(x, weight, bias, gamma, beta))
    assert out.shape == (N, C_out, 10, 10), out.shape
    assert bool(jnp.all(jnp.isfinite(out)))
    assert bool(jnp.allclose(out, ref, atol=5e-2, rtol=5e-2)), \
        float(jnp.max(jnp.abs(out - ref)))

    # Tiled two-pass fallback path, forced with a small tile so the per-core
    # partial-stats / multi-tile machinery is exercised too.
    tiled_fn = jax.jit(functools.partial(first_unit, force_tiled=True, tile_m=128))
    out_t = jax.block_until_ready(tiled_fn(x, weight, bias, gamma, beta))
    assert out_t.shape == (N, C_out, 10, 10), out_t.shape
    assert bool(jnp.allclose(out_t, ref, atol=5e-2, rtol=5e-2)), \
        float(jnp.max(jnp.abs(out_t - ref)))

    print("KERNEL_OK")
</pallas_src>

<mosaic_0001>
module attributes {stable_mosaic.version = 11 : i64} {
  func.func @fused_conv_bn_relu_kernel(%arg0: i32, %arg1: memref<36x256xbf16, #tpu.memory_space<vmem>>, %arg2: memref<8x36xbf16, #tpu.memory_space<vmem>>, %arg3: memref<8x1xf32, #tpu.memory_space<vmem>>, %arg4: memref<8x1xf32, #tpu.memory_space<vmem>>, %arg5: memref<8x256xf32, #tpu.memory_space<vmem>>, %arg6: memref<8x1xf32, #tpu.memory_space<vmem>>, %arg7: memref<8x1xf32, #tpu.memory_space<vmem>>) attributes {dimension_semantics = [#tpu.dimension_semantics<arbitrary>], iteration_bounds = array<i64: 1>, scalar_prefetch = 0 : i64, scratch_operands = 2 : i64, tpu.core_type = #tpu.core_type<tc>, window_params = [{transform_indices = @transform_0, window_bounds = array<i64: 36, 256>}, {pipeline_mode = #tpu.pipeline_mode<synchronous>, transform_indices = @transform_1, window_bounds = array<i64: 8, 36>}, {pipeline_mode = #tpu.pipeline_mode<synchronous>, transform_indices = @transform_2, window_bounds = array<i64: 8, 1>}, {pipeline_mode = #tpu.pipeline_mode<synchronous>, transform_indices = @transform_3, window_bounds = array<i64: 8, 1>}, {pipeline_mode = #tpu.pipeline_mode<synchronous>, transform_indices = @transform_4, window_bounds = array<i64: 8, 256>}]} {
    %c0_i32 = arith.constant 0 : i32
    %0 = arith.cmpi eq, %arg0, %c0_i32 : i32
    %1 = arith.extui %0 : i1 to i32
    %c0_i32_0 = arith.constant 0 : i32
    %2 = arith.cmpi ne, %1, %c0_i32_0 : i32
    scf.if %2 {
      %cst_17 = arith.constant 0.000000e+00 : f32
      %24 = vector.broadcast %cst_17 : f32 to vector<8x1xf32>
      %c0_18 = arith.constant 0 : index
      %c0_19 = arith.constant 0 : index
      %25 = vector.load %arg6[%c0_18, %c0_19] : memref<8x1xf32, #tpu.memory_space<vmem>>, vector<8x1xf32>
      tpu.vector_store %arg6[%c0_18, %c0_19], %24 {strides = array<i32>} : memref<8x1xf32, #tpu.memory_space<vmem>>, vector<8x1xf32>,
      %cst_20 = arith.constant 0.000000e+00 : f32
      %26 = vector.broadcast %cst_20 : f32 to vector<8x1xf32>
      %c0_21 = arith.constant 0 : index
      %c0_22 = arith.constant 0 : index
      %27 = vector.load %arg7[%c0_21, %c0_22] : memref<8x1xf32, #tpu.memory_space<vmem>>, vector<8x1xf32>
      tpu.vector_store %arg7[%c0_21, %c0_22], %26 {strides = array<i32>} : memref<8x1xf32, #tpu.memory_space<vmem>>, vector<8x1xf32>,
    } else {
    }
    %c0 = arith.constant 0 : index
    %c0_1 = arith.constant 0 : index
    %3 = vector.load %arg2[%c0, %c0_1] : memref<8x36xbf16, #tpu.memory_space<vmem>>, vector<8x36xbf16>
    %c0_2 = arith.constant 0 : index
    %c0_3 = arith.constant 0 : index
    %4 = vector.load %arg1[%c0_2, %c0_3] : memref<36x256xbf16, #tpu.memory_space<vmem>>, vector<36x256xbf16>
    %cst = arith.constant dense<0.000000e+00> : vector<8x256xf32>
    %5 = tpu.matmul %3, %4, %cst {dimension_numbers = #tpu.dot_dimension_numbers<[1], [0], [0], [1], [0, 0, 1, 1], [], []>} : vector<8x36xbf16>, vector<36x256xbf16>, vector<8x256xf32> -> vector<8x256xf32>
    %c256_i32 = arith.constant 256 : i32
    %6 = arith.muli %arg0, %c256_i32 : i32
    %7 = tpu.assume_multiple %6, 256 : i32
    %c0_4 = arith.constant 0 : index
    %8 = arith.index_cast %7 : i32 to index
    %9 = vector.load %arg5[%c0_4, %8] : memref<8x256xf32, #tpu.memory_space<vmem>>, vector<8x256xf32>
    tpu.vector_store %arg5[%c0_4, %8], %5 {strides = array<i32>} : memref<8x256xf32, #tpu.memory_space<vmem>>, vector<8x256xf32>,
    %c0_5 = arith.constant 0 : index
    %c0_6 = arith.constant 0 : index
    %10 = vector.load %arg6[%c0_5, %c0_6] : memref<8x1xf32, #tpu.memory_space<vmem>>, vector<8x1xf32>
    %cst_7 = arith.constant dense<0.000000e+00> : vector<8xf32>
    %11 = vector.multi_reduction <add>, %5, %cst_7 [1] : vector<8x256xf32> to vector<8xf32>
    %12 = vector.shape_cast %11 : vector<8xf32> to vector<8x1xf32>
    %13 = arith.addf %10, %12 : vector<8x1xf32>
    %c0_8 = arith.constant 0 : index
    %c0_9 = arith.constant 0 : index
    %14 = vector.load %arg6[%c0_8, %c0_9] : memref<8x1xf32, #tpu.memory_space<vmem>>, vector<8x1xf32>
    tpu.vector_store %arg6[%c0_8, %c0_9], %13 {strides = array<i32>} : memref<8x1xf32, #tpu.memory_space<vmem>>, vector<8x1xf32>,
    %c0_10 = arith.constant 0 : index
    %c0_11 = arith.constant 0 : index
    %15 = vector.load %arg7[%c0_10, %c0_11] : memref<8x1xf32, #tpu.memory_space<vmem>>, vector<8x1xf32>
    %16 = arith.mulf %5, %5 : vector<8x256xf32>
    %cst_12 = arith.constant dense<0.000000e+00> : vector<8xf32>
    %17 = vector.multi_reduction <add>, %16, %cst_12 [1] : vector<8x256xf32> to vector<8xf32>
    %18 = vector.shape_cast %17 : vector<8xf32> to vector<8x1xf32>
    %19 = arith.addf %15, %18 : vector<8x1xf32>
    %c0_13 = arith.constant 0 : index
    %c0_14 = arith.constant 0 : index
    %20 = vector.load %arg7[%c0_13, %c0_14] : memref<8x1xf32, #tpu.memory_space<vmem>>, vector<8x1xf32>
    tpu.vector_store %arg7[%c0_13, %c0_14], %19 {strides = array<i32>} : memref<8x1xf32, #tpu.memory_space<vmem>>, vector<8x1xf32>,
    %c0_i32_15 = arith.constant 0 : i32
    %21 = arith.cmpi eq, %arg0, %c0_i32_15 : i32
    %22 = arith.extui %21 : i1 to i32
    %c0_i32_16 = arith.constant 0 : i32
    %23 = arith.cmpi ne, %22, %c0_i32_16 : i32
    scf.if %23 {
      %c0_17 = arith.constant 0 : index
      %c0_18 = arith.constant 0 : index
      %24 = vector.load %arg6[%c0_17, %c0_18] : memref<8x1xf32, #tpu.memory_space<vmem>>, vector<8x1xf32>
      %cst_19 = arith.constant 5.000000e-03 : f32
      %25 = vector.broadcast %cst_19 : f32 to vector<8x1xf32>
      %26 = arith.mulf %24, %25 : vector<8x1xf32>
      %c0_20 = arith.constant 0 : index
      %c0_21 = arith.constant 0 : index
      %27 = vector.load %arg7[%c0_20, %c0_21] : memref<8x1xf32, #tpu.memory_space<vmem>>, vector<8x1xf32>
      %cst_22 = arith.constant 5.000000e-03 : f32
      %28 = vector.broadcast %cst_22 : f32 to vector<8x1xf32>
      %29 = arith.mulf %27, %28 : vector<8x1xf32>
      %30 = arith.mulf %26, %26 : vector<8x1xf32>
      %31 = arith.subf %29, %30 : vector<8x1xf32>
      %cst_23 = arith.constant 0.000000e+00 : f32
      %32 = vector.broadcast %cst_23 : f32 to vector<8x1xf32>
      %33 = arith.maximumf %31, %32 : vector<8x1xf32>
      %c0_24 = arith.constant 0 : index
      %c0_25 = arith.constant 0 : index
      %34 = vector.load %arg3[%c0_24, %c0_25] : memref<8x1xf32, #tpu.memory_space<vmem>>, vector<8x1xf32>
      %cst_26 = arith.constant 9.99999974E-6 : f32
      %35 = vector.broadcast %cst_26 : f32 to vector<8x1xf32>
      %36 = arith.addf %33, %35 : vector<8x1xf32>
      %37 = math.rsqrt %36 : vector<8x1xf32>
      %38 = arith.mulf %34, %37 : vector<8x1xf32>
      %c0_27 = arith.constant 0 : index
      %c0_28 = arith.constant 0 : index
      %39 = vector.load %arg4[%c0_27, %c0_28] : memref<8x1xf32, #tpu.memory_space<vmem>>, vector<8x1xf32>
      %40 = arith.mulf %26, %38 : vector<8x1xf32>
      %41 = arith.subf %39, %40 : vector<8x1xf32>
      %c0_29 = arith.constant 0 : index
      %c0_30 = arith.constant 0 : index
      %42 = vector.load %arg5[%c0_29, %c0_30] : memref<8x256xf32, #tpu.memory_space<vmem>>, vector<8x256xf32>
      %43 = vector.broadcast %38 : vector<8x1xf32> to vector<8x256xf32>
      %44 = arith.mulf %42, %43 : vector<8x256xf32>
      %45 = vector.broadcast %41 : vector<8x1xf32> to vector<8x256xf32>
      %46 = arith.addf %44, %45 : vector<8x256xf32>
      %cst_31 = arith.constant 0.000000e+00 : f32
      %47 = vector.broadcast %cst_31 : f32 to vector<8x256xf32>
      %48 = arith.maximumf %46, %47 : vector<8x256xf32>
      %c0_32 = arith.constant 0 : index
      %c0_33 = arith.constant 0 : index
      %49 = vector.load %arg5[%c0_32, %c0_33] : memref<8x256xf32, #tpu.memory_space<vmem>>, vector<8x256xf32>
      tpu.vector_store %arg5[%c0_32, %c0_33], %48 {strides = array<i32>} : memref<8x256xf32, #tpu.memory_space<vmem>>, vector<8x256xf32>,
    } else {
    }
    return
  }
  func.func @transform_0(%arg0: i32) -> (i32, i32) {
    %c0_i32 = arith.constant 0 : i32
    %c0_i32_0 = arith.constant 0 : i32
    return %c0_i32, %arg0 : i32, i32
  }
  func.func @transform_1(%arg0: i32) -> (i32, i32) {
    %c0_i32 = arith.constant 0 : i32
    %c0_i32_0 = arith.constant 0 : i32
    %c0_i32_1 = arith.constant 0 : i32
    return %c0_i32, %c0_i32_0 : i32, i32
  }
  func.func @transform_2(%arg0: i32) -> (i32, i32) {
    %c0_i32 = arith.constant 0 : i32
    %c0_i32_0 = arith.constant 0 : i32
    %c0_i32_1 = arith.constant 0 : i32
    return %c0_i32, %c0_i32_0 : i32, i32
  }
  func.func @transform_3(%arg0: i32) -> (i32, i32) {
    %c0_i32 = arith.constant 0 : i32
    %c0_i32_0 = arith.constant 0 : i32
    %c0_i32_1 = arith.constant 0 : i32
    return %c0_i32, %c0_i32_0 : i32, i32
  }
  func.func @transform_4(%arg0: i32) -> (i32, i32) {
    %c0_i32 = arith.constant 0 : i32
    %c0_i32_0 = arith.constant 0 : i32
    %c0_i32_1 = arith.constant 0 : i32
    return %c0_i32, %c0_i32_0 : i32, i32
  }
}

</mosaic_0001>

<bundles_post_ra>
// kernel: first_unit.1
= control target key start
LH: loop header
LB: loop body
LE: loop exit
PB: predicated region body
PF: predicated region fallthrough
CT: control target
= control target key end

     0   :  { %vm60_vm0 = vcmask 1041408   ;;  %vm56_vm1 = vcmask 293888   ;;  %vm22_vm2 = vcmask 7168   ;;  %v195_v20 = vmov 0.0   ;;  %s268_s0 = inlined_call_operand.vmem [shape: bf16[36,256], index: 0, kind: input, shape index: {}]   ;;  %s269_s1 = inlined_call_operand.vmem [shape: bf16[8,36], index: 1, kind: input, shape index: {}]   ;;  %s270_s2 = inlined_call_operand.vmem [shape: f32[8,1], index: 2, kind: input, shape index: {}]   ;;  %s271_s3 = inlined_call_operand.vmem [shape: f32[8,1], index: 3, kind: input, shape index: {}]   ;;  %s272_s4 = inlined_call_operand.vmem [shape: f32[8,256], index: 4, kind: output, shape index: {}]  }
   0x1   :  { %v30_v0 = vld [vmem:[%s268_s0 + $0x20] sm:$0x33]  ;;  %v177_v3 = vld [vmem:[%s268_s0 + $0x10] sm:$0xf]  ;;  %v188_v6 = vld [vmem:[%s268_s0 + $0x14] sm:$0xf0] }
   0x2   :  { %v44_v1 = vunpack.c.l.b16 %v30_v0  ;;  %v45_v2 = vunpack.c.h.b16 %v30_v0  ;;  %v187_v7 = vld [vmem:[%s268_s0 + $0x14] sm:$0xf]  ;;  %v179_v8 = vld [vmem:[%s268_s0 + $0x18] sm:$0xf0]  ;;  %v178_v11 = vor.u32 %v188_v6, %v177_v3  ;;  %v169_v13 = vld [vmem:[%s268_s0] sm:$0xf] }
   0x3   :  { %v182_v12 = vor.u32 %v187_v7, %v179_v8  ;;  %v186_v14 = vld [vmem:[%s268_s0 + $0x4] sm:$0xf0]  ;;  %v185_v15 = vld [vmem:[%s268_s0 + $0x4] sm:$0xf]  ;;  %v171_v16 = vld [vmem:[%s268_s0 + $0x8] sm:$0xf0] }
   0x4   :  { %v50_v4 = vpack.c.b16 %v44_v1, %v44_v1  ;;  %v51_v5 = vpack.c.b16 %v45_v2, %v45_v2  ;;  %v170_v17 = vor.u32 %v186_v14, %v169_v13  ;;  %v174_v18 = vor.u32 %v185_v15, %v171_v16  ;;  %v25_v19 = vld [vmem:[%s269_s1] sm:$0xf]  ;;  %23 = vst.msk [vmem:[#allocation2] sm:$0xff] %vm22_vm2, %v195_v20 }
   0x5   :  { %24 = vst.msk [vmem:[#allocation3] sm:$0xff] %vm22_vm2, %v195_v20  ;;  %v196_v29 = vmov 0   ;;  %v125_v49 = vld [vmem:[%s270_s2] sm:$0xff] }
   0x6   :  { %v62_v9 = vsel %vm60_vm0, %v50_v4, 0  ;;  %v65_v10 = vsel %vm60_vm0, %v51_v5, 0  ;;  %191 = vset.pattern.permute.xlu1 %v196_v29  ;;  %192 = vset.pattern.permute.xlu0 %v196_v29  ;;  %v138_v54 = vld [vmem:[%s271_s3] sm:$0xff] }
   0x7   :  { %72 = vmatpush.bf16.msra.mxu0 %v62_v9  ;;  %85 = vmatpush.bf16.msra.mxu1 %v65_v10 }
   0xb   :  { %73 = vmatpush.bf16.msra.mxu0 %v178_v11  ;;  %86 = vmatpush.bf16.msra.mxu1 %v182_v12  ;;  %v100_v30 = vld [vmem:[#allocation2] sm:$0xff] }
   0xc   :  { %v107_v33 = vld [vmem:[#allocation3] sm:$0xff] }
   0xf   :  { %74 = vmatpush.bf16.msra.mxu0 %v170_v17  ;;  %87 = vmatpush.bf16.msra.mxu1 %v174_v18 }
  0x12   :  { %183 = vmatmul.msk.bf16.vlgmr.msra.gmra.mxu0 %vm56_vm1, %v25_v19  ;;  %184 = vmatmul.msk.bf16.vlgmr.msra.gmra.mxu1 %vm56_vm1, %v25_v19 }
  0x8f   :  { %v76_v21 = vpop.f32.mrf.mxu0  ;;  %v89_v22 = vpop.f32.mrf.mxu1 }
  0x90   :  { %v101_v23 = vadd.f32 %v89_v22, %v76_v21  ;;  %v108_v24 = vmul.f32 %v76_v21, %v76_v21  ;;  %v109_v25 = vmul.f32 %v89_v22, %v89_v22 }
  0x92   :  { %102 = vadd.xlane.f32.xlu0 %v101_v23  ;;  %v110_v28 = vadd.f32 %v109_v25, %v108_v24 }
  0x97   :  { %v78_v26 = vpop.f32.mrf.mxu0  ;;  %v91_v27 = vpop.f32.mrf.mxu1 }
  0x9a   :  { %111 = vadd.xlane.f32.xlu0 %v110_v28 }
 0x105   :  { %v103_v31 = vpop.xlane.xlu0 %102 }
 0x106   :  { %v104_v32 = vadd.f32 %v103_v31, %v100_v30 }
 0x108   :  { %106 = vst.msk [vmem:[#allocation2] sm:$0xff] %vm22_vm2, %v104_v32 }
 0x10d   :  { %v112_v34 = vpop.xlane.xlu0 %111 }
 0x10e   :  { %v113_v35 = vadd.f32 %v112_v34, %v107_v33 }
 0x10f   :  { %v118_v36 = vld [vmem:[#allocation2] sm:$0xff] }
 0x110   :  { %114 = vst.msk [vmem:[#allocation3] sm:$0xff] %vm22_vm2, %v113_v35  ;;  %v119_v37 = vmul.f32 0.005, %v118_v36 }
 0x112   :  { %v122_v40 = vmul.f32 %v119_v37, %v119_v37 }
 0x117   :  { %v120_v38 = vld [vmem:[#allocation3] sm:$0xff] }
 0x118   :  { %v121_v39 = vmul.f32 0.005, %v120_v38 }
 0x11a   :  { %v123_v41 = vsub.f32 %v121_v39, %v122_v40 }
 0x11c   :  { %v124_v42 = vmax.f32 %v123_v41, 0.0 }
 0x11e   :  { %v126_v43 = vadd.f32 1e-05, %v124_v42 }
 0x120   :  { %193 = vrsqrt.f32 %v126_v43  ;;  %vm133_vm4 = vweird.f32 %v126_v43 }
 0x126   :  { %v194_v44 = vpop.eup %193 }
 0x127   :  { %v128_v45 = vmul.f32 %v194_v44, %v126_v43  ;;  %vm134_vm3 = vweird.f32 %v194_v44 }
 0x128   :  { %vm135_vm5 = vmor %vm133_vm4, %vm134_vm3 }
 0x129   :  { %v129_v46 = vmul.f32 %v194_v44, %v128_v45 }
 0x12b   :  { %v130_v47 = vmul.f32 0.5, %v129_v46 }
 0x12d   :  { %v131_v48 = vsub.f32 1.5, %v130_v47 }
 0x12f   :  { %v132_v50 = vmul.f32 %v194_v44, %v131_v48 }
 0x131   :  { %v136_v51 = vsel %vm135_vm5, %v194_v44, %v132_v50 }
 0x132   :  { %v137_v52 = vmul.f32 %v136_v51, %v125_v49 }
 0x134   :  { %145 = vperm.xlu1 %191, %v137_v52   ;;  %v139_v53 = vmul.f32 %v137_v52, %v119_v37 }
 0x136   :  { %v140_v55 = vsub.f32 %v138_v54, %v139_v53 }
 0x13c   :  { %152 = vperm.xlu1 %191, %v140_v55  }
 0x1a6   :  { %v146_v56 = vpop.permute.xlu1 %145 }
 0x1a7   :  { %v148_v57 = vmul.f32 %v146_v56, %v76_v21  ;;  %v149_v58 = vmul.f32 %v146_v56, %v89_v22 }
 0x1ae   :  { %v153_v59 = vpop.permute.xlu1 %152 }
 0x1af   :  { %v155_v60 = vadd.f32 %v153_v59, %v148_v57  ;;  %v156_v61 = vadd.f32 %v153_v59, %v149_v58 }
 0x1b1   :  { %v157_v62 = vmax.f32 %v155_v60, 0.0  ;;  %v158_v63 = vmax.f32 %v156_v61, 0.0 }
 0x1b3   :  { %159 = vst [vmem:[%s272_s4] sm:$0xff] %v157_v62 }
 0x1b4   :  { %160 = vst [vmem:[%s272_s4 + $0x8] sm:$0xff] %v158_v63 }

</bundles_post_ra>
